<compile_context>
chip_gen: v7x
topology: tpu7x:2x2x1
jax: 0.10.0
libtpu: 0.0.40
codegen_flags: <defaults>
</compile_context>

<pallas_src>
import numpy as np
import jax
import jax.numpy as jnp
from jax import lax
from jax.experimental import pallas as pl
from jax.experimental.pallas import tpu as pltpu

KERNEL_SIZE = 121
BN_EPS = 1e-5


# ----------------------------- Pallas kernel ---------------------------------
def _encoder_kernel(flags_ref, x_ref, a_ref, b_ref, o_ref, h_scr):
    """One residual block (or the head) per grid step.

    flags_ref : SMEM (n_stages,) i32  -- 1 iff this stage has an identity residual
    x_ref     : VMEM (N, F) f32       -- padded input, DMA'd once (constant index)
    a_ref     : VMEM (F, F) bf16      -- this stage's folded conv+BN(+shortcut)
    b_ref     : VMEM (1, F) f32       -- this stage's folded bias
    o_ref     : VMEM (N, F) f32       -- lane-dense output (written at last stage)
    h_scr     : VMEM (N, F) f32       -- activation carried across stages
    """
    s = pl.program_id(0)

    @pl.when(s == 0)
    def _():
        h_scr[...] = x_ref[...]

    h = h_scr[...]                                           # (N, F) f32
    y = jnp.dot(h.astype(jnp.bfloat16), a_ref[...],
                preferred_element_type=jnp.float32) + b_ref[...]
    # Identity residual (blocks without a shortcut conv) added in full f32.
    y = y + h * flags_ref[s].astype(jnp.float32)
    h_scr[...] = jnp.maximum(y, 0.0)                         # ReLU (unused after head)

    @pl.when(s == pl.num_programs(0) - 1)
    def _():
        o_ref[...] = y.astype(o_ref.dtype)                   # head: no ReLU


# ----------------------------- packing (init time) ----------------------------
def _conv_to_matrix(w, L_in, stride, padding):
    """Dense matrix T (L_in*C_in, L_out*C_out) s.t. x_flat @ T == conv1d(x).

    Flat layout: x_flat[n, l*C + c] == x[n, c, l].  Zero padding is baked in,
    i.e. taps that fall outside the (short) sequence are simply dropped.
    """
    w = np.asarray(w, np.float32)                            # (C_out, C_in, K)
    C_out, C_in, K = w.shape
    L_out = (L_in + 2 * padding - K) // stride + 1
    T = np.zeros((L_in * C_in, L_out * C_out), np.float32)
    for lo in range(L_out):
        for li in range(L_in):
            j = li - stride * lo + padding
            if 0 <= j < K:
                T[li * C_in:(li + 1) * C_in,
                  lo * C_out:(lo + 1) * C_out] = w[:, :, j].T
    return T, L_out


def pack_params(params, L):
    """Fold conv + BN + shortcut into uniform per-stage (F, F) slabs + biases."""
    stages = []                                              # (A, b, identity_flag)
    L_cur = L
    for layer in params["layers"]:
        for blk in layer:
            T, L_out = _conv_to_matrix(blk["w"], L_cur, blk["stride"],
                                       KERNEL_SIZE // 2)
            scale = np.asarray(blk["scale"], np.float32)
            bias = np.asarray(blk["bias"], np.float32)
            A = T * np.tile(scale, L_out)[None, :]           # BN scale folded in
            b = np.tile(bias, L_out)
            if blk["shortcut"] is not None:                  # conv1x1 + BN shortcut
                sc = blk["shortcut"]
                Ts, Ls = _conv_to_matrix(sc["w"], L_cur, blk["stride"], 0)
                assert Ls == L_out
                A = A + Ts * np.tile(np.asarray(sc["scale"], np.float32),
                                     L_out)[None, :]
                b = b + np.tile(np.asarray(sc["bias"], np.float32), L_out)
                flag = 0
            else:
                flag = 1                                     # identity: added in-kernel (f32)
            stages.append((A, b, flag))
            L_cur = L_out
    # Head: Conv1d(128 -> 1, k=1, bias folded into BN bias) + BatchNorm1d(1).
    h = params["head"]
    T, L_out = _conv_to_matrix(h["w"], L_cur, 1, 0)
    scale = np.asarray(h["scale"], np.float32)
    bias = np.asarray(h["bias"], np.float32)
    stages.append((T * np.tile(scale, L_out)[None, :], np.tile(bias, L_out), 0))

    # Uniform (F, F) slabs, F rounded up to a multiple of 128 (lane-dense).
    dims = [a.shape[0] for a, _, _ in stages] + [a.shape[1] for a, _, _ in stages]
    F = max(128, -(-max(dims) // 128) * 128)
    n = len(stages)
    A_all = np.zeros((n, F, F), np.float32)
    b_all = np.zeros((n, 1, F), np.float32)
    flags = np.zeros((n,), np.int32)
    for i, (A, b, fl) in enumerate(stages):
        A_all[i, :A.shape[0], :A.shape[1]] = A
        b_all[i, 0, :b.shape[0]] = b
        flags[i] = fl
    return {
        "A": jnp.asarray(A_all, jnp.bfloat16),
        "b": jnp.asarray(b_all, jnp.float32),
        "flags": jnp.asarray(flags, jnp.int32),
        "F": F,
        "F_head": stages[-1][0].shape[1],
        "L_out": L_out,
        "n_stages": n,
    }


# ----------------------------- forward (hot path) ------------------------------
def resnet_encoder_forward(packed, x):
    N, C, L = x.shape
    F = packed["F"]
    n_stages = packed["n_stages"]
    A, b, flags = packed["A"], packed["b"], packed["flags"]

    # flat layout: h0[n, l*C + c] = x[n, c, l], zero-padded to F lanes.
    h0 = jnp.transpose(x, (0, 2, 1)).reshape(N, L * C).astype(jnp.float32)
    h0 = jnp.pad(h0, ((0, 0), (0, F - L * C)))

    grid_spec = pltpu.PrefetchScalarGridSpec(
        num_scalar_prefetch=1,                               # flags -> SMEM
        grid=(n_stages,),
        in_specs=[
            pl.BlockSpec((N, F), lambda s, flags: (0, 0)),         # x: DMA'd once
            pl.BlockSpec((None, F, F), lambda s, flags: (s, 0, 0)),  # per-stage A
            pl.BlockSpec((None, 1, F), lambda s, flags: (s, 0, 0)),  # per-stage bias
        ],
        out_specs=pl.BlockSpec((N, F), lambda s, flags: (0, 0)),
        scratch_shapes=[pltpu.VMEM((N, F), jnp.float32)],
    )

    weight_bytes = int(A.size) * 2 + int(b.size) * 4
    io_bytes = int(h0.size) * 4 + int(N * F) * 4
    cost = pl.CostEstimate(flops=2 * N * n_stages * F * F,
                           transcendentals=0,
                           bytes_accessed=weight_bytes + io_bytes)

    out_flat = pl.pallas_call(
        _encoder_kernel,
        out_shape=jax.ShapeDtypeStruct((N, F), jnp.float32),
        grid_spec=grid_spec,
        compiler_params=pltpu.CompilerParams(
            dimension_semantics=("arbitrary",)),
        cost_estimate=cost,
    )(flags, h0, A, b)

    L_fin = packed["L_out"]
    F_head = packed["F_head"]
    return out_flat[:, :F_head].reshape(N, L_fin, 1).transpose(0, 2, 1)  # (N,1,L_fin)


# ----------------------------- parameters -------------------------------------
def _bn_fold(key, c):
    k1, k2, k3, k4 = jax.random.split(key, 4)
    gamma = 1.0 + 0.1 * jax.random.normal(k1, (c,), jnp.float32)
    beta = 0.1 * jax.random.normal(k2, (c,), jnp.float32)
    mean = 0.1 * jax.random.normal(k3, (c,), jnp.float32)
    var = jax.random.uniform(k4, (c,), jnp.float32, 0.5, 1.5)
    scale = gamma / jnp.sqrt(var + BN_EPS)
    bias = beta - mean * scale
    return scale, bias


def init_params(seed=0):
    sizes = [1, 16, 32, 64, 128]
    deepths = [2, 2, 2, 2]
    key = jax.random.PRNGKey(seed)
    layers = []
    for (cin, cout), n in zip(zip(sizes, sizes[1:]), deepths):
        blocks = []
        for bi in range(n):
            b_in = cin if bi == 0 else cout
            stride = 2 if (bi == 0 and cin != cout) else 1
            key, kw, kbn, ksw, ksbn = jax.random.split(key, 5)
            blk = {
                "w": jax.random.normal(kw, (cout, b_in, KERNEL_SIZE), jnp.float32)
                     / np.sqrt(b_in * KERNEL_SIZE),
                "stride": stride,
            }
            blk["scale"], blk["bias"] = _bn_fold(kbn, cout)
            if b_in != cout:
                sc = {"w": jax.random.normal(ksw, (cout, b_in, 1), jnp.float32)
                           / np.sqrt(b_in)}
                sc["scale"], sc["bias"] = _bn_fold(ksbn, cout)
                blk["shortcut"] = sc
            else:
                blk["shortcut"] = None
            blocks.append(blk)
        layers.append(blocks)
    # Head: Conv1d(128, 1, k=1, bias=True) + BatchNorm1d(1); conv bias folded in.
    key, kw, kb, kbn = jax.random.split(key, 4)
    hw = jax.random.normal(kw, (1, sizes[-1], 1), jnp.float32) / np.sqrt(sizes[-1])
    hb = 0.1 * jax.random.normal(kb, (1,), jnp.float32)
    hscale, hbias = _bn_fold(kbn, 1)
    head = {"w": hw, "scale": hscale, "bias": hscale * hb + hbias}
    return {"layers": layers, "head": head}


# ----------------------------- pure-JAX reference ------------------------------
def _conv1d_ref(x, w, stride, padding):
    return lax.conv_general_dilated(
        x, w, window_strides=(stride,), padding=[(padding, padding)],
        dimension_numbers=("NCH", "OIH", "NCH"),
        precision=lax.Precision.HIGHEST)


def resnet_encoder_ref(params, x):
    for layer in params["layers"]:
        for blk in layer:
            if blk["shortcut"] is not None:
                sc = blk["shortcut"]
                res = (_conv1d_ref(x, sc["w"], blk["stride"], 0)
                       * sc["scale"][None, :, None] + sc["bias"][None, :, None])
            else:
                res = x
            y = (_conv1d_ref(x, blk["w"], blk["stride"], KERNEL_SIZE // 2)
                 * blk["scale"][None, :, None] + blk["bias"][None, :, None])
            x = jnp.maximum(y + res, 0.0)
    h = params["head"]
    return (_conv1d_ref(x, h["w"], 1, 0)
            * h["scale"][None, :, None] + h["bias"][None, :, None])


# ----------------------------- main --------------------------------------------
if __name__ == "__main__":
    N, C, L = 2, 1, 64                               # blocks_sizes[0] == 1 input ch
    key = jax.random.PRNGKey(0)
    x = jax.random.normal(jax.random.fold_in(key, 1), (N, C, L), jnp.float32)

    params = init_params(seed=0)                     # raw module parameters
    packed = pack_params(params, L)                  # one-time host-side fold

    fwd = jax.jit(lambda v: resnet_encoder_forward(packed, v))
    out = jax.block_until_ready(fwd(x))

    ref = jax.block_until_ready(resnet_encoder_ref(params, x))
    assert out.shape == (N, 1, 4), out.shape         # 64 -> 32 -> 16 -> 8 -> 4
    max_err = float(jnp.max(jnp.abs(out - ref)))
    assert max_err < 5e-2, f"mismatch vs reference: {max_err}"
    print("KERNEL_OK")
</pallas_src>

<mosaic_0001>
module attributes {stable_mosaic.version = 11 : i64} {
  func.func @_encoder_kernel(%arg0: i32, %arg1: memref<9xi32, #tpu.memory_space<smem>>, %arg2: memref<2x512xf32, #tpu.memory_space<vmem>>, %arg3: memref<1x512x512xbf16, #tpu.memory_space<vmem>>, %arg4: memref<1x1x512xf32, #tpu.memory_space<vmem>>, %arg5: memref<2x512xf32, #tpu.memory_space<vmem>>, %arg6: memref<2x512xf32, #tpu.memory_space<vmem>>) attributes {dimension_semantics = [#tpu.dimension_semantics<arbitrary>], iteration_bounds = array<i64: 9>, scalar_prefetch = 1 : i64, scratch_operands = 1 : i64, tpu.core_type = #tpu.core_type<tc>, window_params = [{pipeline_mode = #tpu.pipeline_mode<synchronous>, transform_indices = @transform_0, window_bounds = array<i64: 2, 512>}, {transform_indices = @transform_1, window_bounds = array<i64: 1, 512, 512>}, {transform_indices = @transform_2, window_bounds = array<i64: 1, 1, 512>}, {pipeline_mode = #tpu.pipeline_mode<synchronous>, transform_indices = @transform_3, window_bounds = array<i64: 2, 512>}]} {
    %c0_i32 = arith.constant 0 : i32
    %0 = arith.cmpi eq, %arg0, %c0_i32 : i32
    %1 = arith.extui %0 : i1 to i32
    %c0_i32_0 = arith.constant 0 : i32
    %2 = arith.cmpi ne, %1, %c0_i32_0 : i32
    scf.if %2 {
      %c0_12 = arith.constant 0 : index
      %c0_13 = arith.constant 0 : index
      %24 = vector.load %arg2[%c0_12, %c0_13] : memref<2x512xf32, #tpu.memory_space<vmem>>, vector<2x512xf32>
      %c0_14 = arith.constant 0 : index
      %c0_15 = arith.constant 0 : index
      %25 = vector.load %arg6[%c0_14, %c0_15] : memref<2x512xf32, #tpu.memory_space<vmem>>, vector<2x512xf32>
      tpu.vector_store %arg6[%c0_14, %c0_15], %24 {strides = array<i32>} : memref<2x512xf32, #tpu.memory_space<vmem>>, vector<2x512xf32>,
    } else {
    }
    %c0 = arith.constant 0 : index
    %c0_1 = arith.constant 0 : index
    %3 = vector.load %arg6[%c0, %c0_1] : memref<2x512xf32, #tpu.memory_space<vmem>>, vector<2x512xf32>
    %4 = arith.truncf %3 : vector<2x512xf32> to vector<2x512xbf16>
    %c0_2 = arith.constant 0 : index
    %c0_3 = arith.constant 0 : index
    %c0_4 = arith.constant 0 : index
    %5 = vector.load %arg3[%c0_2, %c0_3, %c0_4] : memref<1x512x512xbf16, #tpu.memory_space<vmem>>, vector<1x512x512xbf16>
    %6 = vector.shape_cast %5 : vector<1x512x512xbf16> to vector<512x512xbf16>
    %cst = arith.constant dense<0.000000e+00> : vector<2x512xf32>
    %7 = tpu.matmul %4, %6, %cst {dimension_numbers = #tpu.dot_dimension_numbers<[1], [0], [0], [1], [0, 0, 1, 1], [], []>} : vector<2x512xbf16>, vector<512x512xbf16>, vector<2x512xf32> -> vector<2x512xf32>
    %c0_5 = arith.constant 0 : index
    %c0_6 = arith.constant 0 : index
    %c0_7 = arith.constant 0 : index
    %8 = vector.load %arg4[%c0_5, %c0_6, %c0_7] : memref<1x1x512xf32, #tpu.memory_space<vmem>>, vector<1x1x512xf32>
    %9 = vector.shape_cast %8 : vector<1x1x512xf32> to vector<1x512xf32>
    %10 = vector.broadcast %9 : vector<1x512xf32> to vector<2x512xf32>
    %11 = arith.addf %7, %10 : vector<2x512xf32>
    %12 = arith.index_cast %arg0 : i32 to index
    %13 = memref.load %arg1[%12] : memref<9xi32, #tpu.memory_space<smem>>
    %14 = arith.sitofp %13 : i32 to f32
    %15 = vector.broadcast %14 : f32 to vector<2x512xf32>
    %16 = arith.mulf %3, %15 : vector<2x512xf32>
    %17 = arith.addf %11, %16 : vector<2x512xf32>
    %cst_8 = arith.constant 0.000000e+00 : f32
    %18 = vector.broadcast %cst_8 : f32 to vector<2x512xf32>
    %19 = arith.maximumf %17, %18 : vector<2x512xf32>
    %c0_9 = arith.constant 0 : index
    %c0_10 = arith.constant 0 : index
    %20 = vector.load %arg6[%c0_9, %c0_10] : memref<2x512xf32, #tpu.memory_space<vmem>>, vector<2x512xf32>
    tpu.vector_store %arg6[%c0_9, %c0_10], %19 {strides = array<i32>} : memref<2x512xf32, #tpu.memory_space<vmem>>, vector<2x512xf32>,
    %c8_i32 = arith.constant 8 : i32
    %21 = arith.cmpi eq, %arg0, %c8_i32 : i32
    %22 = arith.extui %21 : i1 to i32
    %c0_i32_11 = arith.constant 0 : i32
    %23 = arith.cmpi ne, %22, %c0_i32_11 : i32
    scf.if %23 {
      %c0_12 = arith.constant 0 : index
      %c0_13 = arith.constant 0 : index
      %24 = vector.load %arg5[%c0_12, %c0_13] : memref<2x512xf32, #tpu.memory_space<vmem>>, vector<2x512xf32>
      tpu.vector_store %arg5[%c0_12, %c0_13], %17 {strides = array<i32>} : memref<2x512xf32, #tpu.memory_space<vmem>>, vector<2x512xf32>,
    } else {
    }
    return
  }
  func.func @transform_0(%arg0: i32, %arg1: memref<9xi32, #tpu.memory_space<smem>>) -> (i32, i32) {
    %c0_i32 = arith.constant 0 : i32
    %c0_i32_0 = arith.constant 0 : i32
    %c0_i32_1 = arith.constant 0 : i32
    return %c0_i32, %c0_i32_0 : i32, i32
  }
  func.func @transform_1(%arg0: i32, %arg1: memref<9xi32, #tpu.memory_space<smem>>) -> (i32, i32, i32) {
    %c0_i32 = arith.constant 0 : i32
    %c0_i32_0 = arith.constant 0 : i32
    %c0_i32_1 = arith.constant 0 : i32
    return %arg0, %c0_i32, %c0_i32_0 : i32, i32, i32
  }
  func.func @transform_2(%arg0: i32, %arg1: memref<9xi32, #tpu.memory_space<smem>>) -> (i32, i32, i32) {
    %c0_i32 = arith.constant 0 : i32
    %c0_i32_0 = arith.constant 0 : i32
    %c0_i32_1 = arith.constant 0 : i32
    return %arg0, %c0_i32, %c0_i32_0 : i32, i32, i32
  }
  func.func @transform_3(%arg0: i32, %arg1: memref<9xi32, #tpu.memory_space<smem>>) -> (i32, i32) {
    %c0_i32 = arith.constant 0 : i32
    %c0_i32_0 = arith.constant 0 : i32
    %c0_i32_1 = arith.constant 0 : i32
    return %c0_i32, %c0_i32_0 : i32, i32
  }
}

</mosaic_0001>

<bundles_post_ra>
// kernel: _lambda_.1
= control target key start
LH: loop header
LB: loop body
LE: loop exit
PB: predicated region body
PF: predicated region fallthrough
CT: control target
= control target key end

     0   :  { %s1880_s0 = inlined_call_operand.vmem [shape: s32[9], index: 0, kind: input, shape index: {}]   ;;  %s1881_s1 = inlined_call_operand.vmem [shape: f32[2,512], index: 1, kind: input, shape index: {}]   ;;  %s1882_s2 = inlined_call_operand.vmem [shape: bf16[9,512,512], index: 2, kind: input, shape index: {}]   ;;  %s1883_s3 = inlined_call_operand.vmem [shape: f32[9,1,512], index: 3, kind: input, shape index: {}]   ;;  %s1884_s4 = inlined_call_operand.vmem [shape: f32[2,512], index: 4, kind: output, shape index: {}]  }
   0x1   :  { %s9_s17 = sshll.u32 %s1880_s0, 4  ;;  %s10_s17 = int_to_ptr.vmem [resolvable:$true] %s9_s17 }
   0x2   :  { %s1634_s18 = scalar_lea.vmem %s10_s17, 16  ;;  %p1639_p1 = scmp.lt.s32.totalorder %s10_s17, %s10_s17 }
   0x3   :  { %p1635_p0 = scmp.ne.s32.totalorder %s10_s17, %s1634_s18  ;;  %p1640_p2 = scmp.lt.s32.totalorder %s1634_s18, %s1634_s18 }
   0x5   :  { %p1641_p3 = por %p1640_p2, %p1639_p1 }
   0x7   :  { %p1642_p4 = pnand %p1641_p3, %p1635_p0 }
   0x9   :  { %1645 = shalt.err (!%p1642_p4)  }
   0xa   :  { %s1656_s19 = smov [#allocation4]  }
   0xb   :  { %12 = dma.vmem_to_smem %s10_s17, 16, %s1656_s19, [#allocation3] }
   0xc   :  { %1650 = dma.done.wait [#allocation3], 16 }
   0xd   :  { %1651 = vsyncadd [#allocation3], 4294967280 }
   0xe   :  { %14 = sfence }
   0xf   :  { %s1686_s20 = smov 0  }
  0x10 LB: > { %s1692_s0 = sadd.s32 4294967295, %s1654_s20   ;;  %p1294_p5 = scmp.ge.s32.totalorder %s1654_s20, 1  ;;  %s1654_s20 = sphi %s1686_s20, %s20_s20  }
  0x11   : > { %p148_p6 = scmp.lt.s32.totalorder %s1654_s20, 10 }
  0x13   : > { %p149_p7 = pnand %p1294_p5, %p148_p6 }
  0x14   : > { %p171_p8 = scmp.lt.s32.totalorder (!%p149_p7), %s1692_s0, 8  ;;  %p1298_p9 = scmp.ne.s32.totalorder (!%p149_p7), %s1692_s0, 0 }
  0x15   : > { %152 = sbr.rel (%p149_p7) target bundleno = 393 (0x189), region = 32 }
  0x1c   : > { %s172_s21 = scalar_select %p171_p8, %s1692_s0, 8 }
  0x1d   : > { %183 = sbr.rel (%p1298_p9) target bundleno = 36 (0x24), region = 36  ;;  %v184_v0 = vld [vmem:[%s1881_s1] sm:$0xff] (!%p1298_p9) }
  0x1e   : > { %s1430_s22 = sshll.u32 %s172_s21, 10  ;;  %s1297_s23 = sshll.u32 %s172_s21, 2  ;;  %185 = vst [vmem:[#allocation2] sm:$0xff] (!%p1298_p9), %v184_v0 }
  0x1f   : > { %s1701_s26 = scalar_lea.vmem %s1882_s2, %s1430_s22  ;;  %s1706_s29 = scalar_lea.vmem %s1883_s3, %s1297_s23 }
  0x24 PF: > { %v1441_v1 = vld [vmem:[%s1701_s26 + $0x4] ss:$16 sps:$4 sm:$0xff]   ;;  %v1445_v3 = vld [vmem:[%s1701_s26] ss:$16 sps:$4 sm:$0xff]   ;;  %v1657_v37 = vmov 1983009808   ;;  %v192_v39 = vlaneseq }
  0x25   : > { %v1443_v2 = vld [vmem:[%s1701_s26 + $0x204] ss:$16 sps:$4 sm:$0xff]   ;;  %1003 = vmatprep.subr.bf16.mxu0 %v1441_v1  ;;  %v1446_v4 = vld [vmem:[%s1701_s26 + $0x200] ss:$16 sps:$4 sm:$0xff]   ;;  %v190_v38 = vunpack.c.l.s4 %v1657_v37  ;;  %v1570_v37 = vld [vmem:[%s1701_s26 + $0xac] ss:$16 sps:$4 sm:$0xff]  }
  0x26   : > { %1044 = vmatprep.subr.bf16.mxu1 %v1443_v2  ;;  %v1447_v5 = vld [vmem:[%s1701_s26 + $0x24] ss:$16 sps:$4 sm:$0xff]   ;;  %1004 = vmatpush1.bf16.msra.mxu0 %v1445_v3  ;;  %v1451_v7 = vld [vmem:[%s1701_s26 + $0x20] ss:$16 sps:$4 sm:$0xff]   ;;  %v1751_v44 = vshrl.u32 %v192_v39, 7  ;;  %s1167_s6 = sld [smem:[#allocation4 + %s1692_s0]] }
  0x27   : > { %1045 = vmatpush1.bf16.msra.mxu1 %v1446_v4  ;;  %v1449_v6 = vld [vmem:[%s1701_s26 + $0x224] ss:$16 sps:$4 sm:$0xff]   ;;  %1005 = vmatprep.subr.bf16.mxu0 %v1447_v5  ;;  %v1452_v8 = vld [vmem:[%s1701_s26 + $0x220] ss:$16 sps:$4 sm:$0xff]   ;;  %v191_v43 = vunpack.c.0.s8 %v190_v38  ;;  %v1573_v38 = vld [vmem:[%s1701_s26 + $0x2ac] ss:$16 sps:$4 sm:$0xff]  }
  0x28   : > { %1046 = vmatprep.subr.bf16.mxu1 %v1449_v6  ;;  %v1453_v9 = vld [vmem:[%s1701_s26 + $0x44] ss:$16 sps:$4 sm:$0xff]   ;;  %v1457_v11 = vld [vmem:[%s1701_s26 + $0x40] ss:$16 sps:$4 sm:$0xff]   ;;  %v1568_v39 = vld [vmem:[%s1701_s26 + $0xa8] ss:$16 sps:$4 sm:$0xff]  }
  0x29   : > { %v1455_v10 = vld [vmem:[%s1701_s26 + $0x244] ss:$16 sps:$4 sm:$0xff]   ;;  %v1458_v12 = vld [vmem:[%s1701_s26 + $0x240] ss:$16 sps:$4 sm:$0xff]   ;;  %v1759_v50 = vsub.s32 %v191_v43, %v1751_v44  ;;  %v1574_v43 = vld [vmem:[%s1701_s26 + $0xc8] ss:$16 sps:$4 sm:$0xff]  }
  0x2a   : > { %1006 = vmatpush1.bf16.msra.mxu0 %v1451_v7  ;;  %v1459_v13 = vld [vmem:[%s1701_s26 + $0x64] ss:$16 sps:$4 sm:$0xff]   ;;  %v1463_v15 = vld [vmem:[%s1701_s26 + $0x60] ss:$16 sps:$4 sm:$0xff]   ;;  %p1427_p10 = scmp.ne.s32.totalorder %s1692_s0, 8 }
  0x2b   : > { %1047 = vmatpush1.bf16.msra.mxu1 %v1452_v8  ;;  %1007 = vmatprep.subr.bf16.mxu0 %v1453_v9  ;;  %v1461_v14 = vld [vmem:[%s1701_s26 + $0x264] ss:$16 sps:$4 sm:$0xff]   ;;  %v1464_v16 = vld [vmem:[%s1701_s26 + $0x260] ss:$16 sps:$4 sm:$0xff]  }
  0x2c   : > { %1048 = vmatprep.subr.bf16.mxu1 %v1455_v10  ;;  %v1465_v17 = vld [vmem:[%s1701_s26 + $0x84] ss:$16 sps:$4 sm:$0xff]   ;;  %v1469_v19 = vld [vmem:[%s1701_s26 + $0x80] ss:$16 sps:$4 sm:$0xff]   ;;  %s1168_s7 = scvt.s32.f32 %s1167_s6 }
  0x2d   : > { %v1467_v18 = vld [vmem:[%s1701_s26 + $0x284] ss:$16 sps:$4 sm:$0xff]   ;;  %v1470_v20 = vld [vmem:[%s1701_s26 + $0x280] ss:$16 sps:$4 sm:$0xff]  }
  0x2e   : > { %1008 = vmatpush1.bf16.msra.mxu0 %v1457_v11  ;;  %v1471_v21 = vld [vmem:[%s1701_s26 + $0xa4] ss:$16 sps:$4 sm:$0xff]   ;;  %v1475_v23 = vld [vmem:[%s1701_s26 + $0xa0] ss:$16 sps:$4 sm:$0xff]  }
  0x2f   : > { %1049 = vmatpush1.bf16.msra.mxu1 %v1458_v12  ;;  %1009 = vmatprep.subr.bf16.mxu0 %v1459_v13  ;;  %v1473_v22 = vld [vmem:[%s1701_s26 + $0x2a4] ss:$16 sps:$4 sm:$0xff]   ;;  %v1476_v24 = vld [vmem:[%s1701_s26 + $0x2a0] ss:$16 sps:$4 sm:$0xff]  }
  0x30   : > { %1050 = vmatprep.subr.bf16.mxu1 %v1461_v14  ;;  %v1477_v25 = vld [vmem:[%s1701_s26 + $0xc4] ss:$16 sps:$4 sm:$0xff]   ;;  %v1481_v27 = vld [vmem:[%s1701_s26 + $0xc0] ss:$16 sps:$4 sm:$0xff]  }
  0x31   : > { %v1479_v26 = vld [vmem:[%s1701_s26 + $0x2c4] ss:$16 sps:$4 sm:$0xff]   ;;  %v1482_v28 = vld [vmem:[%s1701_s26 + $0x2c0] ss:$16 sps:$4 sm:$0xff]  }
  0x32   : > { %1010 = vmatpush1.bf16.msra.mxu0 %v1463_v15  ;;  %v1483_v29 = vld [vmem:[%s1701_s26 + $0xe4] ss:$16 sps:$4 sm:$0xff]   ;;  %v1487_v31 = vld [vmem:[%s1701_s26 + $0xe0] ss:$16 sps:$4 sm:$0xff]   ;;  %v1540_v15 = vld [vmem:[%s1701_s26 + $0xc] ss:$16 sps:$4 sm:$0xff]  }
  0x33   : > { %1051 = vmatpush1.bf16.msra.mxu1 %v1464_v16  ;;  %1011 = vmatprep.subr.bf16.mxu0 %v1465_v17  ;;  %v1485_v30 = vld [vmem:[%s1701_s26 + $0x2e4] ss:$16 sps:$4 sm:$0xff]   ;;  %v1488_v32 = vld [vmem:[%s1701_s26 + $0x2e0] ss:$16 sps:$4 sm:$0xff]   ;;  %v1543_v16 = vld [vmem:[%s1701_s26 + $0x20c] ss:$16 sps:$4 sm:$0xff]  }
  0x34   : > { %1052 = vmatprep.subr.bf16.mxu1 %v1467_v18  ;;  %v1489_v33 = vld [vmem:[%s1701_s26 + $0x104] ss:$16 sps:$4 sm:$0xff]   ;;  %v1493_v35 = vld [vmem:[%s1701_s26 + $0x100] ss:$16 sps:$4 sm:$0xff]  }
  0x35   : > { %v1491_v34 = vld [vmem:[%s1701_s26 + $0x304] ss:$16 sps:$4 sm:$0xff]   ;;  %v1494_v36 = vld [vmem:[%s1701_s26 + $0x300] ss:$16 sps:$4 sm:$0xff]  }
  0x36   : > { %1012 = vmatpush1.bf16.msra.mxu0 %v1469_v19  ;;  %v1495_v40 = vld [vmem:[%s1701_s26 + $0x124] ss:$16 sps:$4 sm:$0xff]   ;;  %v1499_v42 = vld [vmem:[%s1701_s26 + $0x120] ss:$16 sps:$4 sm:$0xff]   ;;  %v1538_v19 = vld [vmem:[%s1701_s26 + $0x8] ss:$16 sps:$4 sm:$0xff]  }
  0x37   : > { %1053 = vmatpush1.bf16.msra.mxu1 %v1470_v20  ;;  %1013 = vmatprep.subr.bf16.mxu0 %v1471_v21  ;;  %v1497_v41 = vld [vmem:[%s1701_s26 + $0x324] ss:$16 sps:$4 sm:$0xff]   ;;  %v1500_v45 = vld [vmem:[%s1701_s26 + $0x320] ss:$16 sps:$4 sm:$0xff]   ;;  %v1541_v20 = vld [vmem:[%s1701_s26 + $0x208] ss:$16 sps:$4 sm:$0xff]  }
  0x38   : > { %1054 = vmatprep.subr.bf16.mxu1 %v1473_v22  ;;  %v1501_v46 = vld [vmem:[%s1701_s26 + $0x144] ss:$16 sps:$4 sm:$0xff]   ;;  %v1505_v48 = vld [vmem:[%s1701_s26 + $0x140] ss:$16 sps:$4 sm:$0xff]   ;;  %v1546_v21 = vld [vmem:[%s1701_s26 + $0x2c] ss:$16 sps:$4 sm:$0xff]  }
  0x39   : > { %v1503_v47 = vld [vmem:[%s1701_s26 + $0x344] ss:$16 sps:$4 sm:$0xff]   ;;  %v1506_v49 = vld [vmem:[%s1701_s26 + $0x340] ss:$16 sps:$4 sm:$0xff]   ;;  %v1549_v22 = vld [vmem:[%s1701_s26 + $0x22c] ss:$16 sps:$4 sm:$0xff]  }
  0x3a   : > { %1014 = vmatpush1.bf16.msra.mxu0 %v1475_v23  ;;  %v1507_v51 = vld [vmem:[%s1701_s26 + $0x164] ss:$16 sps:$4 sm:$0xff]   ;;  %v1511_v54 = vld [vmem:[%s1701_s26 + $0x160] ss:$16 sps:$4 sm:$0xff]   ;;  %v1544_v23 = vld [vmem:[%s1701_s26 + $0x28] ss:$16 sps:$4 sm:$0xff]  }
  0x3b   : > { %1055 = vmatpush1.bf16.msra.mxu1 %v1476_v24  ;;  %1015 = vmatprep.subr.bf16.mxu0 %v1477_v25  ;;  %v1509_v52 = vld [vmem:[%s1701_s26 + $0x364] ss:$16 sps:$4 sm:$0xff]   ;;  %v1512_v57 = vld [vmem:[%s1701_s26 + $0x360] ss:$16 sps:$4 sm:$0xff]   ;;  %v1547_v24 = vld [vmem:[%s1701_s26 + $0x228] ss:$16 sps:$4 sm:$0xff]  }
  0x3c   : > { %1056 = vmatprep.subr.bf16.mxu1 %v1479_v26  ;;  %v1763_v53 = vld [vmem:[#allocation2] sm:$0xff]  ;;  %v1552_v25 = vld [vmem:[%s1701_s26 + $0x4c] ss:$16 sps:$4 sm:$0xff]  }
  0x3d   : > { %v195_v55 = vrot.slane %v1763_v53, %v1759_v50  ;;  %v188_v56 = vcombine.high %v1763_v53, %v1763_v53  ;;  %v1513_v58 = vld [vmem:[%s1701_s26 + $0x184] ss:$16 sps:$4 sm:$0xff]   ;;  %v1517_v62 = vld [vmem:[%s1701_s26 + $0x180] ss:$16 sps:$4 sm:$0xff]   ;;  %v1555_v26 = vld [vmem:[%s1701_s26 + $0x24c] ss:$16 sps:$4 sm:$0xff]  }
  0x3e   : > { %1016 = vmatpush1.bf16.msra.mxu0 %v1481_v27  ;;  %v1515_v59 = vld [vmem:[%s1701_s26 + $0x384] ss:$16 sps:$4 sm:$0xff]   ;;  %v1518_v1 = vld [vmem:[%s1701_s26 + $0x380] ss:$16 sps:$4 sm:$0xff]   ;;  %v1550_v27 = vld [vmem:[%s1701_s26 + $0x48] ss:$16 sps:$4 sm:$0xff]  }
  0x3f   : > { %1057 = vmatpush1.bf16.msra.mxu1 %v1482_v28  ;;  %1017 = vmatprep.subr.bf16.mxu0 %v1483_v29  ;;  %v203_v60 = vcombine.high %v195_v55, %v195_v55  ;;  %v202_v61 = vrot.slane %v188_v56, %v1759_v50  ;;  %v1519_v2 = vld [vmem:[%s1701_s26 + $0x1a4] ss:$16 sps:$4 sm:$0xff]   ;;  %v1523_v5 = vld [vmem:[%s1701_s26 + $0x1a0] ss:$16 sps:$4 sm:$0xff]   ;;  %v1790_v17 = vpack.c.bf16 %v195_v55, %v195_v55  ;;  %v1553_v28 = vld [vmem:[%s1701_s26 + $0x248] ss:$16 sps:$4 sm:$0xff]  }
  0x40   : > { %1058 = vmatprep.subr.bf16.mxu1 %v1485_v30  ;;  %v1521_v3 = vld [vmem:[%s1701_s26 + $0x3a4] ss:$16 sps:$4 sm:$0xff]   ;;  %v1524_v6 = vld [vmem:[%s1701_s26 + $0x3a0] ss:$16 sps:$4 sm:$0xff]   ;;  %v1558_v29 = vld [vmem:[%s1701_s26 + $0x6c] ss:$16 sps:$4 sm:$0xff]  }
  0x41   : > { %v210_v63 = vpack.c.bf16 %v203_v60, %v203_v60  ;;  %v204_v0 = vcombine.high %v202_v61, %v202_v61  ;;  %v1525_v7 = vld [vmem:[%s1701_s26 + $0x1c4] ss:$16 sps:$4 sm:$0xff]   ;;  %v1529_v9 = vld [vmem:[%s1701_s26 + $0x1c0] ss:$16 sps:$4 sm:$0xff]   ;;  %v1792_v18 = vpack.c.bf16 %v202_v61, %v202_v61  ;;  %v1561_v30 = vld [vmem:[%s1701_s26 + $0x26c] ss:$16 sps:$4 sm:$0xff]  }
  0x42   : > { %1018 = vmatpush1.bf16.msra.mxu0 %v1487_v31  ;;  %v1527_v8 = vld [vmem:[%s1701_s26 + $0x3c4] ss:$16 sps:$4 sm:$0xff]   ;;  %v1530_v10 = vld [vmem:[%s1701_s26 + $0x3c0] ss:$16 sps:$4 sm:$0xff]   ;;  %v1556_v31 = vld [vmem:[%s1701_s26 + $0x68] ss:$16 sps:$4 sm:$0xff]  }
  0x43   : > { %1059 = vmatpush1.bf16.msra.mxu1 %v1488_v32  ;;  %1019 = vmatprep.subr.bf16.mxu0 %v1489_v33  ;;  %v212_v4 = vpack.c.bf16 %v204_v0, %v204_v0  ;;  %v1531_v11 = vld [vmem:[%s1701_s26 + $0x1e4] ss:$16 sps:$4 sm:$0xff]   ;;  %v1535_v13 = vld [vmem:[%s1701_s26 + $0x1e0] ss:$16 sps:$4 sm:$0xff]   ;;  %v1559_v32 = vld [vmem:[%s1701_s26 + $0x268] ss:$16 sps:$4 sm:$0xff]  }
  0x44   : > { %1060 = vmatprep.subr.bf16.mxu1 %v1491_v34  ;;  %1035 = vmatprep.mubr.bf16.mxu0 %v210_v63  ;;  %v1533_v12 = vld [vmem:[%s1701_s26 + $0x3e4] ss:$16 sps:$4 sm:$0xff]   ;;  %v1536_v14 = vld [vmem:[%s1701_s26 + $0x3e0] ss:$16 sps:$4 sm:$0xff]   ;;  %v1564_v33 = vld [vmem:[%s1701_s26 + $0x8c] ss:$16 sps:$4 sm:$0xff]  }
  0x45   : > { %1076 = vmatprep.mubr.bf16.mxu1 %v212_v4  ;;  %v1567_v34 = vld [vmem:[%s1701_s26 + $0x28c] ss:$16 sps:$4 sm:$0xff]   ;;  %v1589_v55 = vld [vmem:[%s1701_s26 + $0x308] ss:$16 sps:$4 sm:$0xff]  }
  0x46   : > { %1020 = vmatpush1.bf16.msra.mxu0 %v1493_v35  ;;  %v1562_v35 = vld [vmem:[%s1701_s26 + $0x88] ss:$16 sps:$4 sm:$0xff]   ;;  %v1594_v56 = vld [vmem:[%s1701_s26 + $0x12c] ss:$16 sps:$4 sm:$0xff]  }
  0x47   : > { %1061 = vmatpush1.bf16.msra.mxu1 %v1494_v36  ;;  %1021 = vmatprep.subr.bf16.mxu0 %v1495_v40  ;;  %v1565_v36 = vld [vmem:[%s1701_s26 + $0x288] ss:$16 sps:$4 sm:$0xff]   ;;  %v1600_v60 = vld [vmem:[%s1701_s26 + $0x14c] ss:$16 sps:$4 sm:$0xff]  }
  0x48   : > { %1062 = vmatprep.subr.bf16.mxu1 %v1497_v41  ;;  %v1571_v40 = vld [vmem:[%s1701_s26 + $0x2a8] ss:$16 sps:$4 sm:$0xff]   ;;  %v1576_v41 = vld [vmem:[%s1701_s26 + $0xcc] ss:$16 sps:$4 sm:$0xff]  }
  0x49   : > { %v1603_v61 = vld [vmem:[%s1701_s26 + $0x34c] ss:$16 sps:$4 sm:$0xff]  }
  0x4a   : > { %1022 = vmatpush1.bf16.msra.mxu0 %v1499_v42  ;;  %v1579_v42 = vld [vmem:[%s1701_s26 + $0x2cc] ss:$16 sps:$4 sm:$0xff]  }
  0x4b   : > { %1063 = vmatpush1.bf16.msra.mxu1 %v1500_v45  ;;  %1023 = vmatprep.subr.bf16.mxu0 %v1501_v46  ;;  %v1577_v45 = vld [vmem:[%s1701_s26 + $0x2c8] ss:$16 sps:$4 sm:$0xff]   ;;  %v1582_v46 = vld [vmem:[%s1701_s26 + $0xec] ss:$16 sps:$4 sm:$0xff]  }
  0x4c   : > { %1064 = vmatprep.subr.bf16.mxu1 %v1503_v47  ;;  %v1585_v47 = vld [vmem:[%s1701_s26 + $0x2ec] ss:$16 sps:$4 sm:$0xff]  }
  0x4d   : > { %v1606_v0 = vld [vmem:[%s1701_s26 + $0x16c] ss:$16 sps:$4 sm:$0xff]  }
  0x4e   : > { %1024 = vmatpush1.bf16.msra.mxu0 %v1505_v48  ;;  %v1580_v48 = vld [vmem:[%s1701_s26 + $0xe8] ss:$16 sps:$4 sm:$0xff]  }
  0x4f   : > { %1065 = vmatpush1.bf16.msra.mxu1 %v1506_v49  ;;  %1025 = vmatprep.subr.bf16.mxu0 %v1507_v51  ;;  %v1583_v49 = vld [vmem:[%s1701_s26 + $0x2e8] ss:$16 sps:$4 sm:$0xff]   ;;  %v1588_v51 = vld [vmem:[%s1701_s26 + $0x10c] ss:$16 sps:$4 sm:$0xff]  }
  0x50   : > { %1066 = vmatprep.subr.bf16.mxu1 %v1509_v52  ;;  %v1591_v52 = vld [vmem:[%s1701_s26 + $0x30c] ss:$16 sps:$4 sm:$0xff]  }
  0x52   : > { %1026 = vmatpush1.bf16.msra.mxu0 %v1511_v54  ;;  %v1586_v54 = vld [vmem:[%s1701_s26 + $0x108] ss:$16 sps:$4 sm:$0xff]  }
  0x53   : > { %1067 = vmatpush1.bf16.msra.mxu1 %v1512_v57  ;;  %1027 = vmatprep.subr.bf16.mxu0 %v1513_v58  ;;  %v1597_v57 = vld [vmem:[%s1701_s26 + $0x32c] ss:$16 sps:$4 sm:$0xff]   ;;  %v1592_v58 = vld [vmem:[%s1701_s26 + $0x128] ss:$16 sps:$4 sm:$0xff]  }
  0x54   : > { %1068 = vmatprep.subr.bf16.mxu1 %v1515_v59  ;;  %v1595_v59 = vld [vmem:[%s1701_s26 + $0x328] ss:$16 sps:$4 sm:$0xff]  }
  0x56   : > { %1028 = vmatpush1.bf16.msra.mxu0 %v1517_v62  ;;  %v1598_v62 = vld [vmem:[%s1701_s26 + $0x148] ss:$16 sps:$4 sm:$0xff]  }
  0x57   : > { %1069 = vmatpush1.bf16.msra.mxu1 %v1518_v1  ;;  %1029 = vmatprep.subr.bf16.mxu0 %v1519_v2  ;;  %v1609_v1 = vld [vmem:[%s1701_s26 + $0x36c] ss:$16 sps:$4 sm:$0xff]   ;;  %v1604_v2 = vld [vmem:[%s1701_s26 + $0x168] ss:$16 sps:$4 sm:$0xff]  }
  0x58   : > { %1070 = vmatprep.subr.bf16.mxu1 %v1521_v3  ;;  %v1607_v3 = vld [vmem:[%s1701_s26 + $0x368] ss:$16 sps:$4 sm:$0xff]  }
  0x5a   : > { %1030 = vmatpush1.bf16.msra.mxu0 %v1523_v5  ;;  %v1615_v5 = vld [vmem:[%s1701_s26 + $0x38c] ss:$16 sps:$4 sm:$0xff]  }
  0x5b   : > { %1071 = vmatpush1.bf16.msra.mxu1 %v1524_v6  ;;  %1031 = vmatprep.subr.bf16.mxu0 %v1525_v7  ;;  %v1610_v6 = vld [vmem:[%s1701_s26 + $0x188] ss:$16 sps:$4 sm:$0xff]  }
  0x5c   : > { %1072 = vmatprep.subr.bf16.mxu1 %v1527_v8  ;;  %v1613_v7 = vld [vmem:[%s1701_s26 + $0x388] ss:$16 sps:$4 sm:$0xff]   ;;  %v1618_v8 = vld [vmem:[%s1701_s26 + $0x1ac] ss:$16 sps:$4 sm:$0xff]  }
  0x5e   : > { %1032 = vmatpush1.bf16.msra.mxu0 %v1529_v9  ;;  %v1621_v9 = vld [vmem:[%s1701_s26 + $0x3ac] ss:$16 sps:$4 sm:$0xff]  }
  0x5f   : > { %1073 = vmatpush1.bf16.msra.mxu1 %v1530_v10  ;;  %1033 = vmatprep.subr.bf16.mxu0 %v1531_v11  ;;  %v1616_v10 = vld [vmem:[%s1701_s26 + $0x1a8] ss:$16 sps:$4 sm:$0xff]  }
  0x60   : > { %1074 = vmatprep.subr.bf16.mxu1 %v1533_v12  ;;  %v1619_v11 = vld [vmem:[%s1701_s26 + $0x3a8] ss:$16 sps:$4 sm:$0xff]   ;;  %v1624_v12 = vld [vmem:[%s1701_s26 + $0x1cc] ss:$16 sps:$4 sm:$0xff]  }
  0x62   : > { %1034 = vmatpush1.bf16.msra.mxu0 %v1535_v13  ;;  %v1627_v13 = vld [vmem:[%s1701_s26 + $0x3cc] ss:$16 sps:$4 sm:$0xff]  }
  0x63   : > { %1075 = vmatpush1.bf16.msra.mxu1 %v1536_v14  ;;  %1085 = vmatprep.subr.bf16.mxu0 %v1540_v15  ;;  %v1622_v14 = vld [vmem:[%s1701_s26 + $0x1c8] ss:$16 sps:$4 sm:$0xff]  }
  0x64   : > { %1126 = vmatprep.subr.bf16.mxu1 %v1543_v16  ;;  %v1625_v15 = vld [vmem:[%s1701_s26 + $0x3c8] ss:$16 sps:$4 sm:$0xff]   ;;  %v1630_v16 = vld [vmem:[%s1701_s26 + $0x1ec] ss:$16 sps:$4 sm:$0xff]  }
  0x65   : > { %1036 = vmatmul.mubr.bf16.vlgmr.msra.gmra.mrb[0].mxu0 %v1790_v17 }
  0x66   : > { %1077 = vmatmul.mubr.bf16.vlgmr.msra.gmra.mrb[0].mxu1 %v1792_v18  ;;  %1086 = vmatpush1.bf16.msra.mxu0 %v1538_v19  ;;  %v1633_v19 = vld [vmem:[%s1701_s26 + $0x3ec] ss:$16 sps:$4 sm:$0xff]  }
  0x67   : > { %1127 = vmatpush1.bf16.msra.mxu1 %v1541_v20  ;;  %1087 = vmatprep.subr.bf16.mxu0 %v1546_v21  ;;  %v1628_v20 = vld [vmem:[%s1701_s26 + $0x1e8] ss:$16 sps:$4 sm:$0xff]  }
  0x68   : > { %1128 = vmatprep.subr.bf16.mxu1 %v1549_v22  ;;  %1117 = vmatprep.mubr.bf16.mxu0 %v210_v63  ;;  %v1601_v63 = vld [vmem:[%s1701_s26 + $0x348] ss:$16 sps:$4 sm:$0xff]   ;;  %v1169_v22 = vstv %s1168_s7 }
  0x69   : > { %1158 = vmatprep.mubr.bf16.mxu1 %v212_v4  ;;  %v1612_v4 = vld [vmem:[%s1701_s26 + $0x18c] ss:$16 sps:$4 sm:$0xff]   ;;  %v1631_v21 = vld [vmem:[%s1701_s26 + $0x3e8] ss:$16 sps:$4 sm:$0xff]  }
  0x6a   : > { %1088 = vmatpush1.bf16.msra.mxu0 %v1544_v23  ;;  %v345_v23 = vsub.s32 0, %v1751_v44 }
  0x6b   : > { %1129 = vmatpush1.bf16.msra.mxu1 %v1547_v24  ;;  %1089 = vmatprep.subr.bf16.mxu0 %v1552_v25  ;;  %v341_v24 = vld [vmem:[%s1706_s29] sm:$0xf]  ;;  %v1170_v25 = vmul.f32 %v1169_v22, %v1763_v53 }
  0x6c   : > { %1130 = vmatprep.subr.bf16.mxu1 %v1555_v26  ;;  %v349_v26 = vsub.s32 1, %v1751_v44 }
  0x6e   : > { %1090 = vmatpush1.bf16.msra.mxu0 %v1550_v27  ;;  %v346_v27 = vrot.slane %v341_v24, %v345_v23 }
  0x6f   : > { %1131 = vmatpush1.bf16.msra.mxu1 %v1553_v28  ;;  %1091 = vmatprep.subr.bf16.mxu0 %v1558_v29  ;;  %v1179_v28 = vrot.slane %v1170_v25, %v1759_v50  ;;  %v350_v29 = vrot.slane %v341_v24, %v349_v26 }
  0x70   : > { %1132 = vmatprep.subr.bf16.mxu1 %v1561_v30 }
  0x72   : > { %1092 = vmatpush1.bf16.msra.mxu0 %v1556_v31 }
  0x73   : > { %1133 = vmatpush1.bf16.msra.mxu1 %v1559_v32  ;;  %1093 = vmatprep.subr.bf16.mxu0 %v1564_v33 }
  0x74   : > { %1134 = vmatprep.subr.bf16.mxu1 %v1567_v34  ;;  %v1187_v34 = vcombine.high %v1179_v28, %v1179_v28 }
  0x76   : > { %1094 = vmatpush1.bf16.msra.mxu0 %v1562_v35 }
  0x77   : > { %1135 = vmatpush1.bf16.msra.mxu1 %v1565_v36  ;;  %1095 = vmatprep.subr.bf16.mxu0 %v1570_v37 }
  0x78   : > { %1136 = vmatprep.subr.bf16.mxu1 %v1573_v38 }
  0x7a   : > { %1096 = vmatpush1.bf16.msra.mxu0 %v1568_v39 }
  0x7b   : > { %1137 = vmatpush1.bf16.msra.mxu1 %v1571_v40  ;;  %1097 = vmatprep.subr.bf16.mxu0 %v1576_v41 }
  0x7c   : > { %1138 = vmatprep.subr.bf16.mxu1 %v1579_v42 }
  0x7e   : > { %1098 = vmatpush1.bf16.msra.mxu0 %v1574_v43 }
  0x7f   : > { %1139 = vmatpush1.bf16.msra.mxu1 %v1577_v45  ;;  %1099 = vmatprep.subr.bf16.mxu0 %v1582_v46  ;;  %v353_v46 = vsub.s32 2, %v1751_v44 }
  0x80   : > { %1140 = vmatprep.subr.bf16.mxu1 %v1585_v47  ;;  %v1172_v47 = vcombine.high %v1170_v25, %v1170_v25 }
  0x82   : > { %1100 = vmatpush1.bf16.msra.mxu0 %v1580_v48  ;;  %v357_v48 = vsub.s32 3, %v1751_v44 }
  0x83   : > { %1141 = vmatpush1.bf16.msra.mxu1 %v1583_v49  ;;  %1101 = vmatprep.subr.bf16.mxu0 %v1588_v51  ;;  %v354_v49 = vrot.slane %v341_v24, %v353_v46  ;;  %v1186_v51 = vrot.slane %v1172_v47, %v1759_v50 }
  0x84   : > { %1142 = vmatprep.subr.bf16.mxu1 %v1591_v52  ;;  %v358_v52 = vrot.slane %v341_v24, %v357_v48 }
  0x86   : > { %1102 = vmatpush1.bf16.msra.mxu0 %v1586_v54 }
  0x87   : > { %1143 = vmatpush1.bf16.msra.mxu1 %v1589_v55  ;;  %1103 = vmatprep.subr.bf16.mxu0 %v1594_v56 }
  0x88   : > { %1144 = vmatprep.subr.bf16.mxu1 %v1597_v57 }
  0x8a   : > { %1104 = vmatpush1.bf16.msra.mxu0 %v1592_v58 }
  0x8b   : > { %1145 = vmatpush1.bf16.msra.mxu1 %v1595_v59  ;;  %1105 = vmatprep.subr.bf16.mxu0 %v1600_v60  ;;  %v1188_v60 = vcombine.high %v1186_v51, %v1186_v51 }
  0x8c   : > { %1146 = vmatprep.subr.bf16.mxu1 %v1603_v61 }
  0x8e   : > { %1106 = vmatpush1.bf16.msra.mxu0 %v1598_v62 }
  0x8f   : > { %1147 = vmatpush1.bf16.msra.mxu1 %v1601_v63  ;;  %1107 = vmatprep.subr.bf16.mxu0 %v1606_v0 }
  0x90   : > { %1148 = vmatprep.subr.bf16.mxu1 %v1609_v1 }
  0x92   : > { %1108 = vmatpush1.bf16.msra.mxu0 %v1604_v2 }
  0x93   : > { %1149 = vmatpush1.bf16.msra.mxu1 %v1607_v3  ;;  %1109 = vmatprep.subr.bf16.mxu0 %v1612_v4 }
  0x94   : > { %1150 = vmatprep.subr.bf16.mxu1 %v1615_v5 }
  0x96   : > { %1110 = vmatpush1.bf16.msra.mxu0 %v1610_v6 }
  0x97   : > { %1151 = vmatpush1.bf16.msra.mxu1 %v1613_v7  ;;  %1111 = vmatprep.subr.bf16.mxu0 %v1618_v8 }
  0x98   : > { %1152 = vmatprep.subr.bf16.mxu1 %v1621_v9 }
  0x9a   : > { %1112 = vmatpush1.bf16.msra.mxu0 %v1616_v10 }
  0x9b   : > { %1153 = vmatpush1.bf16.msra.mxu1 %v1619_v11  ;;  %1113 = vmatprep.subr.bf16.mxu0 %v1624_v12 }
  0x9c   : > { %1154 = vmatprep.subr.bf16.mxu1 %v1627_v13 }
  0x9e   : > { %1114 = vmatpush1.bf16.msra.mxu0 %v1622_v14 }
  0x9f   : > { %1155 = vmatpush1.bf16.msra.mxu1 %v1625_v15  ;;  %1115 = vmatprep.subr.bf16.mxu0 %v1630_v16 }
  0xa0   : > { %1156 = vmatprep.subr.bf16.mxu1 %v1633_v19 }
  0xa2   : > { %1116 = vmatpush1.bf16.msra.mxu0 %v1628_v20 }
  0xa3   : > { %1157 = vmatpush1.bf16.msra.mxu1 %v1631_v21 }
  0xa5   : > { %1118 = vmatmul.mubr.bf16.vlgmr.msra.gmra.mrb[4].mxu0 %v1790_v17 }
  0xa6   : > { %1159 = vmatmul.mubr.bf16.vlgmr.msra.gmra.mrb[4].mxu1 %v1792_v18 }
 0x138   : > { %v1037_v30 = vpop.f32.mrb[0].mxu0 }
 0x139   : > { %v1078_v31 = vpop.f32.mrb[0].mxu1  ;;  %v1038_v32 = vadd.f32 %v1037_v30, %v346_v27  ;;  %v1039_v17 = vpop.f32.mrb[1].mxu0 }
 0x13a   : > { %v1080_v33 = vpop.f32.mrb[1].mxu1  ;;  %v1040_v18 = vadd.f32 %v1039_v17, %v350_v29  ;;  %v1041_v35 = vpop.f32.mrb[2].mxu0 }
 0x13b   : > { %v1082_v36 = vpop.f32.mrb[2].mxu1  ;;  %v1079_v37 = vadd.f32 %v1078_v31, %v1038_v32  ;;  %v1042_v38 = vpop.f32.mrb[3].mxu0 }
 0x13c   : > { %v1083_v39 = vpop.f32.mrb[3].mxu1  ;;  %v1081_v40 = vadd.f32 %v1080_v33, %v1040_v18 }
 0x13d   : > { %v1193_v53 = vadd.f32 %v1179_v28, %v1079_v37 }
 0x13e   : > { %v1194_v41 = vadd.f32 %v1187_v34, %v1081_v40 }
 0x13f   : > { %v1197_v42 = vmax.f32 %v1193_v53, 0.0 }
 0x140   : > { %v1198_v43 = vmax.f32 %v1194_v41, 0.0  ;;  %v1232_v10 = vcombine.low (!%p1427_p10), %v1193_v53, %v1194_v41 }
 0x142   : > { %v1205_v45 = vcombine.low %v1197_v42, %v1198_v43  ;;  %v1240_v12 = vrot.slane (!%p1427_p10), %v1232_v10, %v1759_v50 }
 0x144   : > { %v1213_v7 = vrot.slane %v1205_v45, %v1759_v50 }
 0x178   : > { %v1119_v54 = vpop.f32.mrb[4].mxu0 }
 0x179   : > { %v1160_v55 = vpop.f32.mrb[4].mxu1  ;;  %v1120_v56 = vadd.f32 %v1119_v54, %v354_v49  ;;  %v1121_v57 = vpop.f32.mrb[5].mxu0 }
 0x17a   : > { %v1162_v58 = vpop.f32.mrb[5].mxu1  ;;  %v1122_v59 = vadd.f32 %v1121_v57, %v358_v52  ;;  %v1123_v61 = vpop.f32.mrb[6].mxu0 }
 0x17b   : > { %v1164_v62 = vpop.f32.mrb[6].mxu1  ;;  %v1161_v63 = vadd.f32 %v1160_v55, %v1120_v56  ;;  %v1124_v0 = vpop.f32.mrb[7].mxu0 }
 0x17c   : > { %v1165_v1 = vpop.f32.mrb[7].mxu1  ;;  %v1163_v2 = vadd.f32 %v1162_v58, %v1122_v59 }
 0x17d   : > { %v1195_v3 = vadd.f32 %v1186_v51, %v1161_v63 }
 0x17e   : > { %v1196_v4 = vadd.f32 %v1188_v60, %v1163_v2 }
 0x17f   : > { %v1199_v44 = vmax.f32 %v1195_v3, 0.0 }
 0x180   : > { %v1200_v5 = vmax.f32 %v1196_v4, 0.0  ;;  %v1233_v11 = vcombine.low (!%p1427_p10), %v1195_v3, %v1196_v4 }
 0x182   : > { %v1206_v6 = vcombine.low %v1199_v44, %v1200_v5  ;;  %1227 = sbr.rel (%p1427_p10) target bundleno = 393 (0x189), region = 40  ;;  %v1247_v13 = vrot.slane (!%p1427_p10), %v1233_v11, %v1759_v50 }
 0x184   : > { %v1220_v8 = vrot.slane %v1206_v6, %v1759_v50  ;;  %v1248_v14 = vcombine.low (!%p1427_p10), %v1240_v12, %v1247_v13 }
 0x186   : > { %v1221_v9 = vcombine.low %v1213_v7, %v1220_v8  ;;  %1250 = vst [vmem:[%s1884_s4] sm:$0xff] (!%p1427_p10), %v1248_v14 }
 0x188   : > { %1223 = vst [vmem:[#allocation2] sm:$0xff] %v1221_v9 }
 0x189 PF: > { %s20_s20 = sadd.s32 1, %s1654_s20  }
 0x18a   : > { %p17_p11 = scmp.ge.s32.totalorder %s20_s20, 11  }
 0x18c   :  { %19 = sbr.rel (!%p17_p11) target bundleno = 16 (0x10), region = 69 }

</bundles_post_ra>
